<compile_context>
chip_gen: v5e
topology: v5e:2x2
jax: 0.10.0
libtpu: 0.0.40
codegen_flags: <defaults>
</compile_context>

<pallas_src>
import math

import jax
import jax.numpy as jnp
from jax.experimental import pallas as pl
from jax.experimental.pallas import tpu as pltpu


def _pick_tile(dim, target, aligns):
    """Largest multiple of an alignment that divides `dim` and is <= target.

    Falls back to the full extent only when `dim` has no aligned divisor (the
    only legal block size for such dims without padding/masking).
    """
    for align in aligns:
        if dim % align:
            continue
        t = min(target, dim)
        t -= t % align
        while t >= align:
            if dim % t == 0:
                return t
            t -= align
    return dim


# ---------------------------------------------------------------------------
# Linear:  y = x @ W^T + b   (torch nn.Linear convention, W kept as (N_out, K))
# ---------------------------------------------------------------------------
def _linear_kernel(x_ref, w_ref, b_ref, o_ref, acc_ref):
    @pl.when(pl.program_id(2) == 0)
    def _init():
        acc_ref[...] = jnp.zeros(acc_ref.shape, dtype=jnp.float32)

    x = x_ref[...].astype(jnp.bfloat16)          # (tm, tk)
    w = w_ref[...].astype(jnp.bfloat16)          # (tn, tk) — torch layout
    # Contract K on both operands (x @ W^T) — avoids any wrapper-side W.T pass.
    acc_ref[...] += jax.lax.dot_general(
        x, w, (((1,), (1,)), ((), ())), preferred_element_type=jnp.float32)

    @pl.when(pl.program_id(2) == pl.num_programs(2) - 1)
    def _finalize():
        o_ref[...] = (acc_ref[...] + b_ref[...].astype(jnp.float32)).astype(o_ref.dtype)


def linear_pallas(x, weight, bias, out_dtype=None):
    """x: (M, K); weight: (N_out, K); bias: (N_out,). Returns (M, N_out)."""
    m, k = x.shape
    n_out, k2 = weight.shape
    assert k == k2 and bias.shape == (n_out,)
    out_dtype = out_dtype or x.dtype
    b2 = bias.reshape(1, n_out)

    tm = _pick_tile(m, 256, aligns=(8,))
    tn = _pick_tile(n_out, 256, aligns=(128,))
    tk = _pick_tile(k, 512, aligns=(128,))

    return pl.pallas_call(
        _linear_kernel,
        out_shape=jax.ShapeDtypeStruct((m, n_out), out_dtype),
        grid_spec=pltpu.PrefetchScalarGridSpec(
            num_scalar_prefetch=0,
            grid=(m // tm, n_out // tn, k // tk),
            in_specs=[
                pl.BlockSpec((tm, tk), lambda i, j, kk: (i, kk)),   # activations
                pl.BlockSpec((tn, tk), lambda i, j, kk: (j, kk)),   # weight (N_out, K)
                pl.BlockSpec((1, tn), lambda i, j, kk: (0, j)),     # bias
            ],
            out_specs=pl.BlockSpec((tm, tn), lambda i, j, kk: (i, j)),
            scratch_shapes=[pltpu.VMEM((tm, tn), jnp.float32)],
        ),
        compiler_params=pltpu.CompilerParams(
            dimension_semantics=("parallel", "parallel", "arbitrary"),
        ),
    )(x, weight, b2)


# ---------------------------------------------------------------------------
# Flash attention (q/k arrive with RoPE + softmax scale already applied)
# ---------------------------------------------------------------------------
def _flash_attn_kernel(q_ref, k_ref, v_ref, o_ref, m_sc, l_sc, acc_sc):
    kv_idx = pl.program_id(2)

    @pl.when(kv_idx == 0)
    def _init():
        m_sc[...] = jnp.full(m_sc.shape, -jnp.inf, dtype=jnp.float32)
        l_sc[...] = jnp.zeros(l_sc.shape, dtype=jnp.float32)
        acc_sc[...] = jnp.zeros(acc_sc.shape, dtype=jnp.float32)

    q = q_ref[0]   # (block_q, D) bf16 — RoPE + sm_scale pre-applied
    k = k_ref[0]   # (block_k, D) bf16 — RoPE pre-applied
    v = v_ref[0]   # (block_k, D) bf16

    # s = q @ k^T (contract head_dim), f32 accumulation on the MXU.
    s = jax.lax.dot_general(q, k, (((1,), (1,)), ((), ())),
                            preferred_element_type=jnp.float32)      # (bq, bk)

    m_prev = m_sc[...]
    m_new = jnp.maximum(m_prev, jnp.max(s, axis=-1, keepdims=True))
    alpha = jnp.exp(m_prev - m_new)
    p = jnp.exp(s - m_new)
    l_sc[...] = alpha * l_sc[...] + jnp.sum(p, axis=-1, keepdims=True)
    acc_sc[...] = alpha * acc_sc[...] + jnp.dot(
        p.astype(v.dtype), v, preferred_element_type=jnp.float32)
    m_sc[...] = m_new

    @pl.when(kv_idx == pl.num_programs(2) - 1)
    def _finalize():
        out = acc_sc[...] * pl.reciprocal(l_sc[...], approx=True)
        o_ref[...] = out[None, :, :].astype(o_ref.dtype)


def flash_attention(q, k, v, out_dtype):
    """q, k, v: (B*H, T, D), rotary + scale already folded in. Returns (B*H, T, D)."""
    bh, t, d = q.shape
    block_q = _pick_tile(t, 128, aligns=(128, 8))
    block_k = _pick_tile(t, 256, aligns=(128, 8))
    grid = (bh, t // block_q, t // block_k)

    return pl.pallas_call(
        _flash_attn_kernel,
        out_shape=jax.ShapeDtypeStruct((bh, t, d), out_dtype),
        grid_spec=pltpu.PrefetchScalarGridSpec(
            num_scalar_prefetch=0,
            grid=grid,
            in_specs=[
                pl.BlockSpec((1, block_q, d), lambda b, qi, ki: (b, qi, 0)),   # q
                pl.BlockSpec((1, block_k, d), lambda b, qi, ki: (b, ki, 0)),   # k
                pl.BlockSpec((1, block_k, d), lambda b, qi, ki: (b, ki, 0)),   # v
            ],
            out_specs=pl.BlockSpec((1, block_q, d), lambda b, qi, ki: (b, qi, 0)),
            scratch_shapes=[
                pltpu.VMEM((block_q, 1), jnp.float32),   # running max
                pltpu.VMEM((block_q, 1), jnp.float32),   # running denom
                pltpu.VMEM((block_q, d), jnp.float32),   # output accumulator
            ],
        ),
        compiler_params=pltpu.CompilerParams(
            dimension_semantics=("parallel", "parallel", "arbitrary"),
        ),
    )(q, k, v)


# ---------------------------------------------------------------------------
# Full module forward
# ---------------------------------------------------------------------------
def rotary_attention(x, w_in, b_in, w_out, b_out, *, num_heads):
    """x: (T, N, E).  Weights in torch nn.Linear layout. Returns (T, N, E)."""
    t_len, n_batch, e = x.shape
    h = num_heads
    d = e // h
    assert h * d == e and d % 2 == 0

    # ---- in_proj ----------------------------------------------------------
    qkv = linear_pallas(x.reshape(t_len * n_batch, e), w_in, b_in)
    qkv = qkv.reshape(t_len, n_batch, 3 * e)
    q, k, v = jnp.split(qkv, 3, axis=-1)

    def to_heads(a):  # (T, N, E) -> (N*H, T, D)
        return (a.reshape(t_len, n_batch, h, d)
                 .transpose(1, 2, 0, 3)
                 .reshape(n_batch * h, t_len, d))

    q, k, v = to_heads(q), to_heads(k), to_heads(v)

    # ---- rotary embedding, applied once outside the flash kv loop ----------
    # Elementwise; XLA fuses it with the head-split transpose above, so the
    # attention kernel's MXU only runs the two flash matmuls.
    inv_freq = 1.0 / (10000.0 ** (jnp.arange(0, d, 2, dtype=jnp.float32) / d))
    pos = jnp.arange(t_len, dtype=jnp.float32)
    freqs = pos[:, None] * inv_freq[None, :]               # (T, D/2)
    emb = jnp.concatenate([freqs, freqs], axis=-1)         # (T, D)
    cos = jnp.cos(emb)[None]                               # (1, T, D)
    sin = jnp.sin(emb)[None]

    def rotate_half(a):
        a1, a2 = jnp.split(a, 2, axis=-1)
        return jnp.concatenate([-a2, a1], axis=-1)

    sm_scale = 1.0 / math.sqrt(d)
    q = ((q * cos + rotate_half(q) * sin) * sm_scale).astype(jnp.bfloat16)
    k = (k * cos + rotate_half(k) * sin).astype(jnp.bfloat16)
    v = v.astype(jnp.bfloat16)

    # ---- flash attention ----------------------------------------------------
    o = flash_attention(q, k, v, out_dtype=x.dtype)        # (N*H, T, D)

    # (N*H, T, D) -> (T*N, E)
    o = (o.reshape(n_batch, h, t_len, d)
          .transpose(2, 0, 1, 3)
          .reshape(t_len * n_batch, e))

    # ---- out_proj -----------------------------------------------------------
    out = linear_pallas(o, w_out, b_out, out_dtype=x.dtype)
    return out.reshape(t_len, n_batch, e)


# ---------------------------------------------------------------------------
# Pure-JAX reference (mirrors the PyTorch module, eval-mode, f32)
# ---------------------------------------------------------------------------
def _reference(x, w_in, b_in, w_out, b_out, num_heads):
    t_len, n_batch, e = x.shape
    h = num_heads
    d = e // h
    qkv = x @ w_in.T + b_in
    q, k, v = jnp.split(qkv, 3, axis=-1)

    def to_heads(a):
        return a.reshape(t_len, n_batch, h, d).transpose(1, 2, 0, 3)  # (N, H, T, D)

    q, k, v = to_heads(q), to_heads(k), to_heads(v)

    inv_freq = 1.0 / (10000.0 ** (jnp.arange(0, d, 2, dtype=jnp.float32) / d))
    pos = jnp.arange(t_len, dtype=jnp.float32)
    freqs = pos[:, None] * inv_freq[None, :]
    emb = jnp.concatenate([freqs, freqs], axis=-1)
    cos = jnp.cos(emb)[None, None]
    sin = jnp.sin(emb)[None, None]

    def rot_half(a):
        a1, a2 = jnp.split(a, 2, axis=-1)
        return jnp.concatenate([-a2, a1], axis=-1)

    q = q * cos + rot_half(q) * sin
    k = k * cos + rot_half(k) * sin

    s = jnp.einsum("nhtd,nhsd->nhts", q, k) * (1.0 / math.sqrt(d))
    p = jax.nn.softmax(s, axis=-1)
    o = jnp.einsum("nhts,nhsd->nhtd", p, v)                    # (N, H, T, D)
    o = o.transpose(2, 0, 1, 3).reshape(t_len, n_batch, e)
    return o @ w_out.T + b_out


if __name__ == "__main__":
    # Small shapes consistent with the module: (T, N, E), E divisible by heads.
    T, N, E, H = 16, 2, 64, 4

    key = jax.random.PRNGKey(0)
    kx, kw1, kb1, kw2, kb2 = jax.random.split(key, 5)
    x = jax.random.normal(kx, (T, N, E), dtype=jnp.float32)
    w_in = jax.random.normal(kw1, (3 * E, E), dtype=jnp.float32) * (1.0 / math.sqrt(E))
    b_in = jax.random.normal(kb1, (3 * E,), dtype=jnp.float32) * 0.01
    w_out = jax.random.normal(kw2, (E, E), dtype=jnp.float32) * (1.0 / math.sqrt(E))
    b_out = jax.random.normal(kb2, (E,), dtype=jnp.float32) * 0.01

    fwd = jax.jit(rotary_attention, static_argnames=("num_heads",))
    out = fwd(x, w_in, b_in, w_out, b_out, num_heads=H)
    out = jax.block_until_ready(out)

    ref = _reference(x, w_in, b_in, w_out, b_out, H)
    assert out.shape == (T, N, E) and out.dtype == x.dtype
    max_err = float(jnp.max(jnp.abs(out - ref)))
    # bf16 MXU operands with f32 accumulation: allow bf16-level tolerance.
    assert jnp.allclose(out, ref, atol=5e-2, rtol=5e-2), f"max abs err={max_err}"

    print("KERNEL_OK")
</pallas_src>

<mosaic_0001>
module attributes {stable_mosaic.version = 11 : i64} {
  func.func @_linear_kernel(%arg0: i32, %arg1: i32, %arg2: i32, %arg3: memref<32x64xf32, #tpu.memory_space<vmem>>, %arg4: memref<192x64xf32, #tpu.memory_space<vmem>>, %arg5: memref<1x192xf32, #tpu.memory_space<vmem>>, %arg6: memref<32x192xf32, #tpu.memory_space<vmem>>, %arg7: memref<32x192xf32, #tpu.memory_space<vmem>>) attributes {dimension_semantics = [#tpu.dimension_semantics<parallel>, #tpu.dimension_semantics<parallel>, #tpu.dimension_semantics<arbitrary>], iteration_bounds = array<i64: 1, 1, 1>, scalar_prefetch = 0 : i64, scratch_operands = 1 : i64, tpu.core_type = #tpu.core_type<tc>, window_params = [{transform_indices = @transform_0, window_bounds = array<i64: 32, 64>}, {transform_indices = @transform_1, window_bounds = array<i64: 192, 64>}, {transform_indices = @transform_2, window_bounds = array<i64: 1, 192>}, {transform_indices = @transform_3, window_bounds = array<i64: 32, 192>}]} {
    %c0_i32 = arith.constant 0 : i32
    %0 = arith.cmpi eq, %arg2, %c0_i32 : i32
    %1 = arith.extui %0 : i1 to i32
    %c0_i32_0 = arith.constant 0 : i32
    %2 = arith.cmpi ne, %1, %c0_i32_0 : i32
    scf.if %2 {
      %cst_10 = arith.constant 0.000000e+00 : f32
      %14 = vector.broadcast %cst_10 : f32 to vector<32x192xf32>
      %c0_11 = arith.constant 0 : index
      %c0_12 = arith.constant 0 : index
      %15 = vector.load %arg7[%c0_11, %c0_12] : memref<32x192xf32, #tpu.memory_space<vmem>>, vector<32x192xf32>
      tpu.vector_store %arg7[%c0_11, %c0_12], %14 {strides = array<i32>} : memref<32x192xf32, #tpu.memory_space<vmem>>, vector<32x192xf32>,
    } else {
    }
    %c0 = arith.constant 0 : index
    %c0_1 = arith.constant 0 : index
    %3 = vector.load %arg3[%c0, %c0_1] : memref<32x64xf32, #tpu.memory_space<vmem>>, vector<32x64xf32>
    %4 = arith.truncf %3 : vector<32x64xf32> to vector<32x64xbf16>
    %c0_2 = arith.constant 0 : index
    %c0_3 = arith.constant 0 : index
    %5 = vector.load %arg4[%c0_2, %c0_3] : memref<192x64xf32, #tpu.memory_space<vmem>>, vector<192x64xf32>
    %6 = arith.truncf %5 : vector<192x64xf32> to vector<192x64xbf16>
    %c0_4 = arith.constant 0 : index
    %c0_5 = arith.constant 0 : index
    %7 = vector.load %arg7[%c0_4, %c0_5] : memref<32x192xf32, #tpu.memory_space<vmem>>, vector<32x192xf32>
    %cst = arith.constant dense<0.000000e+00> : vector<32x192xf32>
    %8 = tpu.matmul %4, %6, %cst {dimension_numbers = #tpu.dot_dimension_numbers<[1], [1], [0], [0], [0, 0, 1, 0], [], []>} : vector<32x64xbf16>, vector<192x64xbf16>, vector<32x192xf32> -> vector<32x192xf32>
    %9 = arith.addf %7, %8 : vector<32x192xf32>
    %c0_6 = arith.constant 0 : index
    %c0_7 = arith.constant 0 : index
    %10 = vector.load %arg7[%c0_6, %c0_7] : memref<32x192xf32, #tpu.memory_space<vmem>>, vector<32x192xf32>
    tpu.vector_store %arg7[%c0_6, %c0_7], %9 {strides = array<i32>} : memref<32x192xf32, #tpu.memory_space<vmem>>, vector<32x192xf32>,
    %c0_i32_8 = arith.constant 0 : i32
    %11 = arith.cmpi eq, %arg2, %c0_i32_8 : i32
    %12 = arith.extui %11 : i1 to i32
    %c0_i32_9 = arith.constant 0 : i32
    %13 = arith.cmpi ne, %12, %c0_i32_9 : i32
    scf.if %13 {
      %c0_10 = arith.constant 0 : index
      %c0_11 = arith.constant 0 : index
      %14 = vector.load %arg7[%c0_10, %c0_11] : memref<32x192xf32, #tpu.memory_space<vmem>>, vector<32x192xf32>
      %c0_12 = arith.constant 0 : index
      %c0_13 = arith.constant 0 : index
      %15 = vector.load %arg5[%c0_12, %c0_13] : memref<1x192xf32, #tpu.memory_space<vmem>>, vector<1x192xf32>
      %16 = vector.broadcast %15 : vector<1x192xf32> to vector<32x192xf32>
      %17 = arith.addf %14, %16 : vector<32x192xf32>
      %c0_14 = arith.constant 0 : index
      %c0_15 = arith.constant 0 : index
      %18 = vector.load %arg6[%c0_14, %c0_15] : memref<32x192xf32, #tpu.memory_space<vmem>>, vector<32x192xf32>
      tpu.vector_store %arg6[%c0_14, %c0_15], %17 {strides = array<i32>} : memref<32x192xf32, #tpu.memory_space<vmem>>, vector<32x192xf32>,
    } else {
    }
    return
  }
  func.func @transform_0(%arg0: i32, %arg1: i32, %arg2: i32) -> (i32, i32) {
    %c0_i32 = arith.constant 0 : i32
    return %arg0, %arg2 : i32, i32
  }
  func.func @transform_1(%arg0: i32, %arg1: i32, %arg2: i32) -> (i32, i32) {
    %c0_i32 = arith.constant 0 : i32
    return %arg1, %arg2 : i32, i32
  }
  func.func @transform_2(%arg0: i32, %arg1: i32, %arg2: i32) -> (i32, i32) {
    %c0_i32 = arith.constant 0 : i32
    %c0_i32_0 = arith.constant 0 : i32
    return %c0_i32, %arg1 : i32, i32
  }
  func.func @transform_3(%arg0: i32, %arg1: i32, %arg2: i32) -> (i32, i32) {
    %c0_i32 = arith.constant 0 : i32
    return %arg0, %arg1 : i32, i32
  }
}

module attributes {stable_mosaic.version = 11 : i64} {
  func.func @_flash_attn_kernel(%arg0: i32, %arg1: i32, %arg2: i32, %arg3: memref<1x16x16xbf16, #tpu.memory_space<vmem>>, %arg4: memref<1x16x16xbf16, #tpu.memory_space<vmem>>, %arg5: memref<1x16x16xbf16, #tpu.memory_space<vmem>>, %arg6: memref<1x16x16xf32, #tpu.memory_space<vmem>>, %arg7: memref<16x1xf32, #tpu.memory_space<vmem>>, %arg8: memref<16x1xf32, #tpu.memory_space<vmem>>, %arg9: memref<16x16xf32, #tpu.memory_space<vmem>>) attributes {dimension_semantics = [#tpu.dimension_semantics<parallel>, #tpu.dimension_semantics<parallel>, #tpu.dimension_semantics<arbitrary>], iteration_bounds = array<i64: 8, 1, 1>, scalar_prefetch = 0 : i64, scratch_operands = 3 : i64, tpu.core_type = #tpu.core_type<tc>, window_params = [{transform_indices = @transform_0, window_bounds = array<i64: 1, 16, 16>}, {transform_indices = @transform_1, window_bounds = array<i64: 1, 16, 16>}, {transform_indices = @transform_2, window_bounds = array<i64: 1, 16, 16>}, {transform_indices = @transform_3, window_bounds = array<i64: 1, 16, 16>}]} {
    %c0_i32 = arith.constant 0 : i32
    %0 = arith.cmpi eq, %arg2, %c0_i32 : i32
    %1 = arith.extui %0 : i1 to i32
    %c0_i32_0 = arith.constant 0 : i32
    %2 = arith.cmpi ne, %1, %c0_i32_0 : i32
    scf.if %2 {
      %cst_26 = arith.constant 0xFF800000 : f32
      %36 = vector.broadcast %cst_26 : f32 to vector<16x1xf32>
      %c0_27 = arith.constant 0 : index
      %c0_28 = arith.constant 0 : index
      %37 = vector.load %arg7[%c0_27, %c0_28] : memref<16x1xf32, #tpu.memory_space<vmem>>, vector<16x1xf32>
      tpu.vector_store %arg7[%c0_27, %c0_28], %36 {strides = array<i32>} : memref<16x1xf32, #tpu.memory_space<vmem>>, vector<16x1xf32>,
      %cst_29 = arith.constant 0.000000e+00 : f32
      %38 = vector.broadcast %cst_29 : f32 to vector<16x1xf32>
      %c0_30 = arith.constant 0 : index
      %c0_31 = arith.constant 0 : index
      %39 = vector.load %arg8[%c0_30, %c0_31] : memref<16x1xf32, #tpu.memory_space<vmem>>, vector<16x1xf32>
      tpu.vector_store %arg8[%c0_30, %c0_31], %38 {strides = array<i32>} : memref<16x1xf32, #tpu.memory_space<vmem>>, vector<16x1xf32>,
      %cst_32 = arith.constant 0.000000e+00 : f32
      %40 = vector.broadcast %cst_32 : f32 to vector<16x16xf32>
      %c0_33 = arith.constant 0 : index
      %c0_34 = arith.constant 0 : index
      %41 = vector.load %arg9[%c0_33, %c0_34] : memref<16x16xf32, #tpu.memory_space<vmem>>, vector<16x16xf32>
      tpu.vector_store %arg9[%c0_33, %c0_34], %40 {strides = array<i32>} : memref<16x16xf32, #tpu.memory_space<vmem>>, vector<16x16xf32>,
    } else {
    }
    %c0 = arith.constant 0 : index
    %c0_1 = arith.constant 0 : index
    %c0_2 = arith.constant 0 : index
    %3 = vector.load %arg3[%c0, %c0_1, %c0_2] : memref<1x16x16xbf16, #tpu.memory_space<vmem>>, vector<1x16x16xbf16>
    %4 = vector.shape_cast %3 : vector<1x16x16xbf16> to vector<16x16xbf16>
    %c0_3 = arith.constant 0 : index
    %c0_4 = arith.constant 0 : index
    %c0_5 = arith.constant 0 : index
    %5 = vector.load %arg4[%c0_3, %c0_4, %c0_5] : memref<1x16x16xbf16, #tpu.memory_space<vmem>>, vector<1x16x16xbf16>
    %6 = vector.shape_cast %5 : vector<1x16x16xbf16> to vector<16x16xbf16>
    %c0_6 = arith.constant 0 : index
    %c0_7 = arith.constant 0 : index
    %c0_8 = arith.constant 0 : index
    %7 = vector.load %arg5[%c0_6, %c0_7, %c0_8] : memref<1x16x16xbf16, #tpu.memory_space<vmem>>, vector<1x16x16xbf16>
    %8 = vector.shape_cast %7 : vector<1x16x16xbf16> to vector<16x16xbf16>
    %cst = arith.constant dense<0.000000e+00> : vector<16x16xf32>
    %9 = tpu.matmul %4, %6, %cst {dimension_numbers = #tpu.dot_dimension_numbers<[1], [1], [0], [0], [0, 0, 1, 0], [], []>} : vector<16x16xbf16>, vector<16x16xbf16>, vector<16x16xf32> -> vector<16x16xf32>
    %c0_9 = arith.constant 0 : index
    %c0_10 = arith.constant 0 : index
    %10 = vector.load %arg7[%c0_9, %c0_10] : memref<16x1xf32, #tpu.memory_space<vmem>>, vector<16x1xf32>
    %cst_11 = arith.constant dense<0xFF800000> : vector<16xf32>
    %11 = vector.multi_reduction <maximumf>, %9, %cst_11 [1] : vector<16x16xf32> to vector<16xf32>
    %12 = vector.shape_cast %11 : vector<16xf32> to vector<16x1xf32>
    %13 = arith.maximumf %10, %12 : vector<16x1xf32>
    %14 = arith.subf %10, %13 : vector<16x1xf32>
    %15 = math.exp %14 : vector<16x1xf32>
    %16 = vector.broadcast %13 : vector<16x1xf32> to vector<16x16xf32>
    %17 = arith.subf %9, %16 : vector<16x16xf32>
    %18 = math.exp %17 : vector<16x16xf32>
    %c0_12 = arith.constant 0 : index
    %c0_13 = arith.constant 0 : index
    %19 = vector.load %arg8[%c0_12, %c0_13] : memref<16x1xf32, #tpu.memory_space<vmem>>, vector<16x1xf32>
    %20 = arith.mulf %15, %19 : vector<16x1xf32>
    %cst_14 = arith.constant dense<0.000000e+00> : vector<16xf32>
    %21 = vector.multi_reduction <add>, %18, %cst_14 [1] : vector<16x16xf32> to vector<16xf32>
    %22 = vector.shape_cast %21 : vector<16xf32> to vector<16x1xf32>
    %23 = arith.addf %20, %22 : vector<16x1xf32>
    %c0_15 = arith.constant 0 : index
    %c0_16 = arith.constant 0 : index
    %24 = vector.load %arg8[%c0_15, %c0_16] : memref<16x1xf32, #tpu.memory_space<vmem>>, vector<16x1xf32>
    tpu.vector_store %arg8[%c0_15, %c0_16], %23 {strides = array<i32>} : memref<16x1xf32, #tpu.memory_space<vmem>>, vector<16x1xf32>,
    %c0_17 = arith.constant 0 : index
    %c0_18 = arith.constant 0 : index
    %25 = vector.load %arg9[%c0_17, %c0_18] : memref<16x16xf32, #tpu.memory_space<vmem>>, vector<16x16xf32>
    %26 = vector.broadcast %15 : vector<16x1xf32> to vector<16x16xf32>
    %27 = arith.mulf %26, %25 : vector<16x16xf32>
    %28 = arith.truncf %18 : vector<16x16xf32> to vector<16x16xbf16>
    %cst_19 = arith.constant dense<0.000000e+00> : vector<16x16xf32>
    %29 = tpu.matmul %28, %8, %cst_19 {dimension_numbers = #tpu.dot_dimension_numbers<[1], [0], [0], [1], [0, 0, 1, 1], [], []>} : vector<16x16xbf16>, vector<16x16xbf16>, vector<16x16xf32> -> vector<16x16xf32>
    %30 = arith.addf %27, %29 : vector<16x16xf32>
    %c0_20 = arith.constant 0 : index
    %c0_21 = arith.constant 0 : index
    %31 = vector.load %arg9[%c0_20, %c0_21] : memref<16x16xf32, #tpu.memory_space<vmem>>, vector<16x16xf32>
    tpu.vector_store %arg9[%c0_20, %c0_21], %30 {strides = array<i32>} : memref<16x16xf32, #tpu.memory_space<vmem>>, vector<16x16xf32>,
    %c0_22 = arith.constant 0 : index
    %c0_23 = arith.constant 0 : index
    %32 = vector.load %arg7[%c0_22, %c0_23] : memref<16x1xf32, #tpu.memory_space<vmem>>, vector<16x1xf32>
    tpu.vector_store %arg7[%c0_22, %c0_23], %13 {strides = array<i32>} : memref<16x1xf32, #tpu.memory_space<vmem>>, vector<16x1xf32>,
    %c0_i32_24 = arith.constant 0 : i32
    %33 = arith.cmpi eq, %arg2, %c0_i32_24 : i32
    %34 = arith.extui %33 : i1 to i32
    %c0_i32_25 = arith.constant 0 : i32
    %35 = arith.cmpi ne, %34, %c0_i32_25 : i32
    scf.if %35 {
      %c0_26 = arith.constant 0 : index
      %c0_27 = arith.constant 0 : index
      %36 = vector.load %arg9[%c0_26, %c0_27] : memref<16x16xf32, #tpu.memory_space<vmem>>, vector<16x16xf32>
      %c0_28 = arith.constant 0 : index
      %c0_29 = arith.constant 0 : index
      %37 = vector.load %arg8[%c0_28, %c0_29] : memref<16x1xf32, #tpu.memory_space<vmem>>, vector<16x1xf32>
      %38 = tpu.reciprocal %37 {approx = true} : vector<16x1xf32> -> vector<16x1xf32>
      %39 = vector.broadcast %38 : vector<16x1xf32> to vector<16x16xf32>
      %40 = arith.mulf %36, %39 : vector<16x16xf32>
      %41 = vector.shape_cast %40 : vector<16x16xf32> to vector<1x16x16xf32>
      %c0_30 = arith.constant 0 : index
      %c0_31 = arith.constant 0 : index
      %c0_32 = arith.constant 0 : index
      %42 = vector.load %arg6[%c0_30, %c0_31, %c0_32] : memref<1x16x16xf32, #tpu.memory_space<vmem>>, vector<1x16x16xf32>
      tpu.vector_store %arg6[%c0_30, %c0_31, %c0_32], %41 {strides = array<i32>} : memref<1x16x16xf32, #tpu.memory_space<vmem>>, vector<1x16x16xf32>,
    } else {
    }
    return
  }
  func.func @transform_0(%arg0: i32, %arg1: i32, %arg2: i32) -> (i32, i32, i32) {
    %c0_i32 = arith.constant 0 : i32
    %c0_i32_0 = arith.constant 0 : i32
    return %arg0, %arg1, %c0_i32 : i32, i32, i32
  }
  func.func @transform_1(%arg0: i32, %arg1: i32, %arg2: i32) -> (i32, i32, i32) {
    %c0_i32 = arith.constant 0 : i32
    %c0_i32_0 = arith.constant 0 : i32
    return %arg0, %arg2, %c0_i32 : i32, i32, i32
  }
  func.func @transform_2(%arg0: i32, %arg1: i32, %arg2: i32) -> (i32, i32, i32) {
    %c0_i32 = arith.constant 0 : i32
    %c0_i32_0 = arith.constant 0 : i32
    return %arg0, %arg2, %c0_i32 : i32, i32, i32
  }
  func.func @transform_3(%arg0: i32, %arg1: i32, %arg2: i32) -> (i32, i32, i32) {
    %c0_i32 = arith.constant 0 : i32
    %c0_i32_0 = arith.constant 0 : i32
    return %arg0, %arg1, %c0_i32 : i32, i32, i32
  }
}

module attributes {stable_mosaic.version = 11 : i64} {
  func.func @_linear_kernel(%arg0: i32, %arg1: i32, %arg2: i32, %arg3: memref<32x64xf32, #tpu.memory_space<vmem>>, %arg4: memref<64x64xf32, #tpu.memory_space<vmem>>, %arg5: memref<1x64xf32, #tpu.memory_space<vmem>>, %arg6: memref<32x64xf32, #tpu.memory_space<vmem>>, %arg7: memref<32x64xf32, #tpu.memory_space<vmem>>) attributes {dimension_semantics = [#tpu.dimension_semantics<parallel>, #tpu.dimension_semantics<parallel>, #tpu.dimension_semantics<arbitrary>], iteration_bounds = array<i64: 1, 1, 1>, scalar_prefetch = 0 : i64, scratch_operands = 1 : i64, tpu.core_type = #tpu.core_type<tc>, window_params = [{transform_indices = @transform_0, window_bounds = array<i64: 32, 64>}, {transform_indices = @transform_1, window_bounds = array<i64: 64, 64>}, {transform_indices = @transform_2, window_bounds = array<i64: 1, 64>}, {transform_indices = @transform_3, window_bounds = array<i64: 32, 64>}]} {
    %c0_i32 = arith.constant 0 : i32
    %0 = arith.cmpi eq, %arg2, %c0_i32 : i32
    %1 = arith.extui %0 : i1 to i32
    %c0_i32_0 = arith.constant 0 : i32
    %2 = arith.cmpi ne, %1, %c0_i32_0 : i32
    scf.if %2 {
      %cst_10 = arith.constant 0.000000e+00 : f32
      %14 = vector.broadcast %cst_10 : f32 to vector<32x64xf32>
      %c0_11 = arith.constant 0 : index
      %c0_12 = arith.constant 0 : index
      %15 = vector.load %arg7[%c0_11, %c0_12] : memref<32x64xf32, #tpu.memory_space<vmem>>, vector<32x64xf32>
      tpu.vector_store %arg7[%c0_11, %c0_12], %14 {strides = array<i32>} : memref<32x64xf32, #tpu.memory_space<vmem>>, vector<32x64xf32>,
    } else {
    }
    %c0 = arith.constant 0 : index
    %c0_1 = arith.constant 0 : index
    %3 = vector.load %arg3[%c0, %c0_1] : memref<32x64xf32, #tpu.memory_space<vmem>>, vector<32x64xf32>
    %4 = arith.truncf %3 : vector<32x64xf32> to vector<32x64xbf16>
    %c0_2 = arith.constant 0 : index
    %c0_3 = arith.constant 0 : index
    %5 = vector.load %arg4[%c0_2, %c0_3] : memref<64x64xf32, #tpu.memory_space<vmem>>, vector<64x64xf32>
    %6 = arith.truncf %5 : vector<64x64xf32> to vector<64x64xbf16>
    %c0_4 = arith.constant 0 : index
    %c0_5 = arith.constant 0 : index
    %7 = vector.load %arg7[%c0_4, %c0_5] : memref<32x64xf32, #tpu.memory_space<vmem>>, vector<32x64xf32>
    %cst = arith.constant dense<0.000000e+00> : vector<32x64xf32>
    %8 = tpu.matmul %4, %6, %cst {dimension_numbers = #tpu.dot_dimension_numbers<[1], [1], [0], [0], [0, 0, 1, 0], [], []>} : vector<32x64xbf16>, vector<64x64xbf16>, vector<32x64xf32> -> vector<32x64xf32>
    %9 = arith.addf %7, %8 : vector<32x64xf32>
    %c0_6 = arith.constant 0 : index
    %c0_7 = arith.constant 0 : index
    %10 = vector.load %arg7[%c0_6, %c0_7] : memref<32x64xf32, #tpu.memory_space<vmem>>, vector<32x64xf32>
    tpu.vector_store %arg7[%c0_6, %c0_7], %9 {strides = array<i32>} : memref<32x64xf32, #tpu.memory_space<vmem>>, vector<32x64xf32>,
    %c0_i32_8 = arith.constant 0 : i32
    %11 = arith.cmpi eq, %arg2, %c0_i32_8 : i32
    %12 = arith.extui %11 : i1 to i32
    %c0_i32_9 = arith.constant 0 : i32
    %13 = arith.cmpi ne, %12, %c0_i32_9 : i32
    scf.if %13 {
      %c0_10 = arith.constant 0 : index
      %c0_11 = arith.constant 0 : index
      %14 = vector.load %arg7[%c0_10, %c0_11] : memref<32x64xf32, #tpu.memory_space<vmem>>, vector<32x64xf32>
      %c0_12 = arith.constant 0 : index
      %c0_13 = arith.constant 0 : index
      %15 = vector.load %arg5[%c0_12, %c0_13] : memref<1x64xf32, #tpu.memory_space<vmem>>, vector<1x64xf32>
      %16 = vector.broadcast %15 : vector<1x64xf32> to vector<32x64xf32>
      %17 = arith.addf %14, %16 : vector<32x64xf32>
      %c0_14 = arith.constant 0 : index
      %c0_15 = arith.constant 0 : index
      %18 = vector.load %arg6[%c0_14, %c0_15] : memref<32x64xf32, #tpu.memory_space<vmem>>, vector<32x64xf32>
      tpu.vector_store %arg6[%c0_14, %c0_15], %17 {strides = array<i32>} : memref<32x64xf32, #tpu.memory_space<vmem>>, vector<32x64xf32>,
    } else {
    }
    return
  }
  func.func @transform_0(%arg0: i32, %arg1: i32, %arg2: i32) -> (i32, i32) {
    %c0_i32 = arith.constant 0 : i32
    return %arg0, %arg2 : i32, i32
  }
  func.func @transform_1(%arg0: i32, %arg1: i32, %arg2: i32) -> (i32, i32) {
    %c0_i32 = arith.constant 0 : i32
    return %arg1, %arg2 : i32, i32
  }
  func.func @transform_2(%arg0: i32, %arg1: i32, %arg2: i32) -> (i32, i32) {
    %c0_i32 = arith.constant 0 : i32
    %c0_i32_0 = arith.constant 0 : i32
    return %c0_i32, %arg1 : i32, i32
  }
  func.func @transform_3(%arg0: i32, %arg1: i32, %arg2: i32) -> (i32, i32) {
    %c0_i32 = arith.constant 0 : i32
    return %arg0, %arg1 : i32, i32
  }
}

</mosaic_0001>

<bundles_post_ra>
// kernel: split.18
= control target key start
LH: loop header
LB: loop body
LE: loop exit
PB: predicated region body
PF: predicated region fallthrough
CT: control target
= control target key end

     0   :  { %s67_s0 = inlined_call_operand.vmem [shape: f32[16,2,192], index: 0, kind: input, shape index: {}]   ;;  %s68_s1 = inlined_call_operand.vmem [shape: bf16[16,2,64], index: 1, kind: output, shape index: {}]  }
   0x1   :  { %v26_v0 = vld [vmem:[%s67_s0 + $0x8] sm:$0xff]  ;;  %v29_v2 = vld [vmem:[%s67_s0 + $0x18] sm:$0xff] }
   0x2   :  { %v27_v1 = vld [vmem:[%s67_s0 + $0x28] sm:$0xff]  ;;  %v6_v3 = vpack.c.bf16 0.0, %v26_v0  ;;  %v16_v5 = vpack.c.bf16 0.0, %v29_v2  ;;  %v31_v6 = vld [vmem:[%s67_s0 + $0x38] sm:$0xff] }
   0x3   :  { %v11_v4 = vpack.c.bf16 0.0, %v27_v1  ;;  %v21_v7 = vpack.c.bf16 0.0, %v31_v6 }
   0x4   :  { %7 = vst [vmem:[%s68_s1] sm:$0xf] %v6_v3 }
   0x5   :  { %28 = vst [vmem:[%s68_s1 + $0x8] sm:$0xf] %v11_v4 }
   0x6   :  { %30 = vst [vmem:[%s68_s1 + $0x4] sm:$0xf] %v16_v5 }
   0x7   :  { %32 = vst [vmem:[%s68_s1 + $0xc] sm:$0xf] %v21_v7 }

// kernel: rotary_attention.3
= control target key start
LH: loop header
LB: loop body
LE: loop exit
PB: predicated region body
PF: predicated region fallthrough
CT: control target
= control target key end

     0   :  { %vm20_vm0 = vcmask 523264   ;;  %v225_v41 = vmov 0.0   ;;  %s385_s1 = inlined_call_operand.vmem [shape: f32[192,64], index: 1, kind: input, shape index: {}]   ;;  %s386_s0 = inlined_call_operand.vmem [shape: f32[32,64], index: 0, kind: input, shape index: {}]   ;;  %s387_s2 = inlined_call_operand.vmem [shape: f32[1,192], index: 2, kind: input, shape index: {}]   ;;  %s388_s3 = inlined_call_operand.vmem [shape: f32[32,192], index: 3, kind: output, shape index: {}]  }
   0x1   :  { %v48_v0 = vld [vmem:[%s385_s1 + $0x70] sm:$0xff]  ;;  %v49_v1 = vld [vmem:[%s385_s1 + $0x78] sm:$0xff]  ;;  %v46_v5 = vld [vmem:[%s385_s1 + $0x60] sm:$0xff]  ;;  %21 = vst.msk [vmem:[#allocation2 + $0x8] sm:$0xff] %vm20_vm0, %v225_v41 }
   0x2   :  { %v65_v2 = vpack.c.bf16 %v49_v1, %v48_v0  ;;  %v56_v3 = vld [vmem:[%s385_s1 + $0xb0] sm:$0xff]  ;;  %v57_v4 = vld [vmem:[%s385_s1 + $0xb8] sm:$0xff]  ;;  %v47_v6 = vld [vmem:[%s385_s1 + $0x68] sm:$0xff]  ;;  %23 = vst.msk [vmem:[#allocation2 + $0x18] sm:$0xff] %vm20_vm0, %v225_v41 }
   0x3   :  { %v69_v7 = vpack.c.bf16 %v57_v4, %v56_v3  ;;  %v54_v9 = vld [vmem:[%s385_s1 + $0xa0] sm:$0xff]  ;;  %v55_v10 = vld [vmem:[%s385_s1 + $0xa8] sm:$0xff]  ;;  %v64_v12 = vpack.c.bf16 %v47_v6, %v46_v5  ;;  %v44_v15 = vld [vmem:[%s385_s1 + $0x50] sm:$0xff]  ;;  %25 = vst.msk [vmem:[#allocation2 + $0x28] sm:$0xff] %vm20_vm0, %v225_v41 }
   0x4   :  { %v107_v8 = vsel %vm20_vm0, %v65_v2, 0  ;;  %v68_v13 = vpack.c.bf16 %v55_v10, %v54_v9  ;;  %v45_v16 = vld [vmem:[%s385_s1 + $0x58] sm:$0xff]  ;;  %v52_v18 = vld [vmem:[%s385_s1 + $0x90] sm:$0xff]  ;;  %v42_v23 = vld [vmem:[%s385_s1 + $0x40] sm:$0xff]  ;;  %27 = vst.msk [vmem:[#allocation2 + $0x38] sm:$0xff] %vm20_vm0, %v225_v41 }
   0x5   :  { %121 = vmatpush.bf16.xpose.msra.mxu0 %v107_v8  ;;  %216 = vmatpush.bf16.xpose.msra.mxu2 %v107_v8  ;;  %v119_v11 = vsel %vm20_vm0, %v69_v7, 0  ;;  %v104_v14 = vsel %vm20_vm0, %v64_v12, 0  ;;  %v53_v19 = vld [vmem:[%s385_s1 + $0x98] sm:$0xff]  ;;  %v63_v20 = vpack.c.bf16 %v45_v16, %v44_v15  ;;  %v43_v24 = vld [vmem:[%s385_s1 + $0x48] sm:$0xff]  ;;  %v50_v26 = vld [vmem:[%s385_s1 + $0x80] sm:$0xff] }
   0x6   :  { %144 = vmatpush.bf16.xpose.msra.mxu1 %v119_v11  ;;  %v116_v17 = vsel %vm20_vm0, %v68_v13, 0  ;;  %v67_v21 = vpack.c.bf16 %v53_v19, %v52_v18  ;;  %v51_v27 = vld [vmem:[%s385_s1 + $0x88] sm:$0xff]  ;;  %v62_v28 = vpack.c.bf16 %v43_v24, %v42_v23  ;;  %v40_v31 = vld [vmem:[%s385_s1 + $0x30] sm:$0xff]  ;;  %v41_v32 = vld [vmem:[%s385_s1 + $0x38] sm:$0xff] }
   0x7   :  { %v101_v22 = vsel %vm20_vm0, %v63_v20, 0  ;;  %v66_v29 = vpack.c.bf16 %v51_v27, %v50_v26  ;;  %v61_v34 = vpack.c.bf16 %v41_v32, %v40_v31  ;;  %v28_v35 = vld [vmem:[%s386_s0] sm:$0xff]  ;;  %v29_v36 = vld [vmem:[%s386_s0 + $0x8] sm:$0xff]  ;;  %v36_v44 = vld [vmem:[%s385_s1 + $0x10] sm:$0xff] }
   0x8   :  { %v113_v25 = vsel %vm20_vm0, %v67_v21, 0  ;;  %v98_v30 = vsel %vm20_vm0, %v62_v28, 0  ;;  %v32_v38 = vpack.c.bf16 %v29_v36, %v28_v35  ;;  %v38_v39 = vld [vmem:[%s385_s1 + $0x20] sm:$0xff]  ;;  %v39_v40 = vld [vmem:[%s385_s1 + $0x28] sm:$0xff]  ;;  %v37_v45 = vld [vmem:[%s385_s1 + $0x18] sm:$0xff] }
   0x9   :  { %v110_v33 = vsel %vm20_vm0, %v66_v29, 0  ;;  %v95_v37 = vsel %vm20_vm0, %v61_v34, 0  ;;  %v60_v42 = vpack.c.bf16 %v39_v40, %v38_v39  ;;  %v59_v46 = vpack.c.bf16 %v37_v45, %v36_v44  ;;  %v30_v47 = vld [vmem:[%s386_s0 + $0x10] sm:$0xff]  ;;  %v31_v48 = vld [vmem:[%s386_s0 + $0x18] sm:$0xff]  ;;  %v34_v51 = vld [vmem:[%s385_s1] sm:$0xff] }
   0xa   :  { %v33_v50 = vpack.c.bf16 %v31_v48, %v30_v47  ;;  %v35_v52 = vld [vmem:[%s385_s1 + $0x8] sm:$0xff]  ;;  %v186_v58 = vld [vmem:[%s387_s2] sm:$0x3]  ;;  %v73_v59 = vld [vmem:[#allocation2 + $0x18] sm:$0xff] }
   0xb   :  { %v92_v43 = vsel %vm20_vm0, %v60_v42, 0  ;;  %v89_v49 = vsel %vm20_vm0, %v59_v46, 0  ;;  %v58_v53 = vpack.c.bf16 %v35_v52, %v34_v51  ;;  %v71_v55 = vld [vmem:[#allocation2 + $0x8] sm:$0xff]  ;;  %v189_v60 = vperm.slane %v186_v58, 1  ;;  %v77_v6 = vld [vmem:[#allocation2 + $0x38] sm:$0xff] }
   0xc   :  { %v75_v1 = vld [vmem:[#allocation2 + $0x28] sm:$0xff]  ;;  %v188_v11 = vperm.slane %v186_v58, 0 }
   0xd   :  { %122 = vmatpush.bf16.xpose.msra.mxu0 %v104_v14  ;;  %217 = vmatpush.bf16.xpose.msra.mxu2 %v104_v14  ;;  %v86_v54 = vsel %vm20_vm0, %v58_v53, 0 }
   0xe   :  { %145 = vmatpush.bf16.xpose.msra.mxu1 %v116_v17 }
  0x15   :  { %123 = vmatpush.bf16.xpose.msra.mxu0 %v101_v22  ;;  %218 = vmatpush.bf16.xpose.msra.mxu2 %v101_v22 }
  0x16   :  { %146 = vmatpush.bf16.xpose.msra.mxu1 %v113_v25 }
  0x1d   :  { %124 = vmatpush.bf16.xpose.msra.mxu0 %v98_v30  ;;  %219 = vmatpush.bf16.xpose.msra.mxu2 %v98_v30 }
  0x1e   :  { %147 = vmatpush.bf16.xpose.msra.mxu1 %v110_v33 }
  0x25   :  { %125 = vmatpush.bf16.xpose.msra.mxu0 %v95_v37  ;;  %220 = vmatpush.bf16.xpose.msra.mxu2 %v95_v37 }
  0x26   :  { %214 = vmatmul.msk.bf16.vlgmr.msra.gmra.mxu1 %vm20_vm0, %v32_v38 }
  0x2d   :  { %126 = vmatpush.bf16.xpose.msra.mxu0 %v92_v43  ;;  %221 = vmatpush.bf16.xpose.msra.mxu2 %v92_v43 }
  0x35   :  { %127 = vmatpush.bf16.xpose.msra.mxu0 %v89_v49  ;;  %222 = vmatpush.bf16.xpose.msra.mxu2 %v89_v49 }
  0x36   :  { %215 = vmatmul.msk.bf16.gmra.mxu1 %vm20_vm0, %v33_v50 }
  0x3d   :  { %128 = vmatpush.bf16.xpose.msra.mxu0 %v86_v54  ;;  %223 = vmatpush.bf16.xpose.msra.mxu2 %v86_v54 }
  0x44   :  { %212 = vmatmul.msk.bf16.vlgmr.msra.gmra.mxu0 %vm20_vm0, %v32_v38  ;;  %213 = vmatmul.msk.bf16.vlgmr.msra.gmra.mxu2 %vm20_vm0, %v33_v50 }
  0xa3   :  { %v149_v56 = vpop.f32.mrf.mxu1 }
  0xa4   :  { %v160_v57 = vadd.f32 %v149_v56, %v71_v55 }
  0xa6   :  { %168 = vst.msk [vmem:[#allocation2 + $0x8] sm:$0xff] %vm20_vm0, %v160_v57 }
  0xab   :  { %v151_v61 = vpop.f32.mrf.mxu1 }
  0xac   :  { %v162_v62 = vadd.f32 %v151_v61, %v73_v59 }
  0xad   :  { %v179_v63 = vld [vmem:[#allocation2 + $0x8] sm:$0xff] }
  0xae   :  { %v193_v0 = vadd.f32 %v189_v60, %v179_v63  ;;  %170 = vst.msk [vmem:[#allocation2 + $0x18] sm:$0xff] %vm20_vm0, %v162_v62 }
  0xb0   :  { %201 = vst.msk [vmem:[%s388_s3 + $0x8] sm:$0xff] %vm20_vm0, %v193_v0 }
  0xb3   :  { %v154_v2 = vpop.f32.mrf.mxu1 }
  0xb4   :  { %v164_v3 = vadd.f32 %v154_v2, %v75_v1 }
  0xb5   :  { %v181_v4 = vld [vmem:[#allocation2 + $0x18] sm:$0xff] }
  0xb6   :  { %v195_v5 = vadd.f32 %v189_v60, %v181_v4  ;;  %172 = vst.msk [vmem:[#allocation2 + $0x28] sm:$0xff] %vm20_vm0, %v164_v3 }
  0xb8   :  { %203 = vst.msk [vmem:[%s388_s3 + $0x18] sm:$0xff] %vm20_vm0, %v195_v5 }
  0xbb   :  { %v156_v7 = vpop.f32.mrf.mxu1 }
  0xbc   :  { %v166_v8 = vadd.f32 %v156_v7, %v77_v6 }
  0xbd   :  { %v183_v9 = vld [vmem:[#allocation2 + $0x28] sm:$0xff] }
  0xbe   :  { %v197_v10 = vadd.f32 %v189_v60, %v183_v9  ;;  %174 = vst.msk [vmem:[#allocation2 + $0x38] sm:$0xff] %vm20_vm0, %v166_v8 }
  0xc0   :  { %205 = vst.msk [vmem:[%s388_s3 + $0x28] sm:$0xff] %vm20_vm0, %v197_v10 }
  0xc1   :  { %v130_v12 = vpop.f32.mrf.mxu0 }
  0xc2   :  { %v192_v13 = vadd.f32 %v188_v11, %v130_v12 }
  0xc4   :  { %200 = vst [vmem:[%s388_s3] sm:$0xff] %v192_v13 }
  0xc5   :  { %v185_v14 = vld [vmem:[#allocation2 + $0x38] sm:$0xff] }
  0xc6   :  { %v199_v15 = vadd.f32 %v189_v60, %v185_v14 }
  0xc7   :  { %v135_v16 = vpop.f32.mrf.mxu2 }
  0xc8   :  { %207 = vst.msk [vmem:[%s388_s3 + $0x38] sm:$0xff] %vm20_vm0, %v199_v15  ;;  %v196_v18 = vadd.f32 %v188_v11, %v135_v16 }
  0xc9   :  { %v132_v17 = vpop.f32.mrf.mxu0 }
  0xca   :  { %204 = vst [vmem:[%s388_s3 + $0x20] sm:$0xff] %v196_v18  ;;  %v194_v19 = vadd.f32 %v188_v11, %v132_v17 }
  0xcc   :  { %202 = vst [vmem:[%s388_s3 + $0x10] sm:$0xff] %v194_v19 }
  0xcf   :  { %v137_v20 = vpop.f32.mrf.mxu2 }
  0xd0   :  { %v198_v21 = vadd.f32 %v188_v11, %v137_v20 }
  0xd2   :  { %206 = vst [vmem:[%s388_s3 + $0x30] sm:$0xff] %v198_v21 }

// kernel: rotary_attention.4
= control target key start
LH: loop header
LB: loop body
LE: loop exit
PB: predicated region body
PF: predicated region fallthrough
CT: control target
= control target key end

     0   :  { %s704_s12 = smov 0   ;;  %s706_s13 = smov 0   ;;  %s773_s0 = inlined_call_operand.vmem [shape: bf16[8,16,16], index: 0, kind: input, shape index: {}]   ;;  %s774_s1 = inlined_call_operand.vmem [shape: bf16[8,16,16], index: 1, kind: input, shape index: {}]   ;;  %s775_s2 = inlined_call_operand.vmem [shape: bf16[8,16,16], index: 2, kind: input, shape index: {}]   ;;  %s776_s3 = inlined_call_operand.vmem [shape: f32[8,16,16], index: 3, kind: output, shape index: {}]  }
   0x1   :  { %s708_s14 = smov 0  }
   0x2 LB: > { %s32_s15 = sadd.s32 1, %s675_s13  ;;  %p583_p0 = scmp.ge.s32.totalorder %s679_s14, 1  ;;  %s679_s14 = sphi %s708_s14, %s13_s14   ;;  %s675_s13 = sphi %s706_s13, %s778_s13   ;;  %s671_s12 = sphi %s704_s12, %s777_s12  }
   0x3   : > { %p34_p1 = scmp.ge.s32.totalorder %s32_s15, 8  ;;  %p199_p2 = scmp.lt.s32.totalorder %s679_s14, 9 }
   0x5   : > { %s780_s15 = smov (%p34_p1, %s32_s15), 0  ;;  %p200_p3 = pnand %p583_p0, %p199_p2 }
   0x6   : > { %p250_p4 = scmp.lt.s32.totalorder (!%p200_p3), %s671_s12, 7 }
   0x7   : > { %203 = sbr.rel (%p200_p3) target bundleno = 655 (0x28f), region = 32 }
   0xc   : > { %s782_s12 = smov (!%p250_p4, %s671_s12), 7  ;;  %vm299_vm0 = vcmask 130048   ;;  %vm294_vm1 = vcmask 7168   ;;  %v681_v3 = vmov -inf   ;;  %v682_v8 = vmov 0  }
   0xd   : > { %s725_s16 = sshll.u32 %s782_s12, 3  ;;  %295 = vst.msk [vmem:[#allocation2] sm:$0xff] %vm294_vm1, %v681_v3  ;;  %642 = vset.pattern.permute.xlu1 %v682_v8  ;;  %643 = vset.pattern.permute.xlu0 %v682_v8  ;;  %v683_v9 = vmov 0.0   ;;  %s611_s26 = sshll.u32 %s782_s12, 4 }
   0xe   : > { %s267_s19 = scalar_lea.vmem %s774_s1, %s725_s16  ;;  %s257_s22 = scalar_lea.vmem %s773_s0, %s725_s16  ;;  %296 = vst.msk [vmem:[#allocation2 + $0x8] sm:$0xff] %vm294_vm1, %v681_v3  ;;  %644 = vset.pattern.permute.xlu2 %v682_v8 }
   0xf   : > { %v613_v0 = vld [vmem:[%s267_s19] sm:$0xff]  ;;  %300 = vst.msk [vmem:[#allocation4] sm:$0xff] %vm299_vm0, %v683_v9  ;;  %s277_s25 = scalar_lea.vmem %s775_s2, %s725_s16  ;;  %s287_s29 = scalar_lea.vmem %s776_s3, %s611_s26 }
  0x10   : > { %v323_v1 = vsel %vm299_vm0, %v613_v0, 0  ;;  %v612_v2 = vld [vmem:[%s257_s22] sm:$0xff]  ;;  %297 = vst.msk [vmem:[#allocation3] sm:$0xff] %vm294_vm1, %v683_v9 }
  0x11   : > { %332 = vmatpush.bf16.xpose.msra.mxu0 %v323_v1  ;;  %298 = vst.msk [vmem:[#allocation3 + $0x8] sm:$0xff] %vm294_vm1, %v683_v9  ;;  %v614_v22 = vld [vmem:[%s277_s25] sm:$0xff] }
  0x12   : > { %301 = vst.msk [vmem:[#allocation4 + $0x8] sm:$0xff] %vm299_vm0, %v683_v9  ;;  %417 = vmatpush.bf16.msra.mxu1 %v614_v22 }
  0x14   : > { %v339_v10 = vld [vmem:[#allocation2] sm:$0xff] }
  0x15   : > { %v340_v15 = vld [vmem:[#allocation2 + $0x8] sm:$0xff] }
  0x16   : > { %v386_v43 = vld [vmem:[#allocation4] sm:$0xff] }
  0x17   : > { %v371_v34 = vld [vmem:[#allocation3] sm:$0xff] }
  0x18   : > { %600 = vmatmul.msk.bf16.vlgmr.msra.gmra.mxu0 %vm299_vm0, %v612_v2  ;;  %v372_v38 = vld [vmem:[#allocation3 + $0x8] sm:$0xff] }
  0x19   : > { %v387_v50 = vld [vmem:[#allocation4 + $0x8] sm:$0xff] }
  0x95   : > { %v334_v4 = vpop.f32.mrf.mxu0 }
  0x96   : > { %v341_v5 = vsel %vm299_vm0, %v334_v4, -inf }
  0x97   : > { %342 = vmax.xlane.f32.xlu0 %v341_v5 }
  0x9d   : > { %v336_v6 = vpop.f32.mrf.mxu0 }
  0x9e   : > { %v344_v7 = vsel %vm299_vm0, %v336_v6, -inf }
  0x9f   : > { %345 = vmax.xlane.f32.xlu0 %v344_v7 }
 0x10a   : > { %v343_v11 = vpop.xlane.xlu0 %342 }
 0x10b   : > { %v347_v12 = vmax.f32 %v339_v10, %v343_v11 }
 0x10d   : > { %v349_v13 = vsub.f32 %v339_v10, %v347_v12  ;;  %428 = vst.msk [vmem:[#allocation2] sm:$0xff] %vm294_vm1, %v347_v12  ;;  %357 = vperm.xlu1 %642, %v347_v12  }
 0x10f   : > { %v351_v14 = vmul.f32 1.442695, %v349_v13 }
 0x111   : > { %645 = vpow2.f32 %v351_v14 }
 0x112   : > { %v346_v16 = vpop.xlane.xlu0 %345 }
 0x113   : > { %v348_v17 = vmax.f32 %v340_v15, %v346_v16 }
 0x115   : > { %v350_v18 = vsub.f32 %v340_v15, %v348_v17  ;;  %429 = vst.msk [vmem:[#allocation2 + $0x8] sm:$0xff] %vm294_vm1, %v348_v17  ;;  %362 = vperm.xlu1 %642, %v348_v17  }
 0x117   : > { %v646_v19 = vpop.eup %645  ;;  %v353_v20 = vmul.f32 1.442695, %v350_v18 }
 0x118   : > { %390 = vperm.xlu0 %643, %v646_v19   ;;  %v373_v35 = vmul.f32 %v646_v19, %v371_v34 }
 0x119   : > { %647 = vpow2.f32 %v353_v20 }
 0x11f   : > { %v648_v21 = vpop.eup %647 }
 0x120   : > { %395 = vperm.xlu1 %642, %v648_v21   ;;  %v374_v39 = vmul.f32 %v648_v21, %v372_v38 }
 0x17f   : > { %v358_v23 = vpop.permute.xlu1 %357 }
 0x180   : > { %v365_v24 = vsub.f32 %v334_v4, %v358_v23 }
 0x182   : > { %v367_v25 = vmul.f32 1.442695, %v365_v24 }
 0x184   : > { %649 = vpow2.f32 %v367_v25 }
 0x187   : > { %v363_v26 = vpop.permute.xlu1 %362 }
 0x188   : > { %v366_v27 = vsub.f32 %v336_v6, %v363_v26 }
 0x18a   : > { %v650_v28 = vpop.eup %649  ;;  %v369_v29 = vmul.f32 1.442695, %v366_v27  ;;  %v391_v44 = vpop.permute.xlu0 %390 }
 0x18b   : > { %v375_v30 = vsel %vm299_vm0, %v650_v28, 0.0  ;;  %v398_v46 = vmul.f32 %v391_v44, %v386_v43 }
 0x18c   : > { %651 = vpow2.f32 %v369_v29  ;;  %376 = vadd.xlane.f32.xlu2 %v375_v30 }
 0x192   : > { %v652_v31 = vpop.eup %651  ;;  %v396_v51 = vpop.permute.xlu1 %395 }
 0x193   : > { %v378_v32 = vsel %vm299_vm0, %v652_v31, 0.0  ;;  %v400_v33 = vpack.c.bf16 %v652_v31, %v650_v28  ;;  %v399_v53 = vmul.f32 %v396_v51, %v387_v50 }
 0x194   : > { %379 = vadd.xlane.f32.xlu2 %v378_v32 }
 0x195   : > { %605 = vmatmul.msk.bf16.vlgmr.msra.gmra.mxu1 %vm299_vm0, %v400_v33 }
 0x1ff   : > { %v377_v36 = vpop.xlane.xlu2 %376 }
 0x200   : > { %v381_v37 = vadd.f32 %v377_v36, %v373_v35 }
 0x202   : > { %384 = vst.msk [vmem:[#allocation3] sm:$0xff] %vm294_vm1, %v381_v37 }
 0x207   : > { %v380_v40 = vpop.xlane.xlu2 %379 }
 0x208   : > { %v382_v41 = vadd.f32 %v380_v40, %v374_v39 }
 0x209   : > { %v435_v42 = vld [vmem:[#allocation3] sm:$0xff] }
 0x20a   : > { %385 = vst.msk [vmem:[#allocation3 + $0x8] sm:$0xff] %vm294_vm1, %v382_v41  ;;  %653 = vrcp.f32 %v435_v42 }
 0x210   : > { %v654_v45 = vpop.eup %653 }
 0x211   : > { %441 = vperm.xlu2 %644, %v654_v45   ;;  %v436_v47 = vld [vmem:[#allocation3 + $0x8] sm:$0xff] }
 0x212   : > { %v419_v48 = vpop.f32.mrf.mxu1  ;;  %655 = vrcp.f32 %v436_v47 }
 0x213   : > { %v424_v49 = vadd.f32 %v419_v48, %v398_v46 }
 0x215   : > { %426 = vst.msk [vmem:[#allocation4] sm:$0xff] %vm299_vm0, %v424_v49 }
 0x218   : > { %v656_v52 = vpop.eup %655 }
 0x219   : > { %446 = vperm.xlu1 %642, %v656_v52  }
 0x21a   : > { %v421_v54 = vpop.f32.mrf.mxu1 }
 0x21b   : > { %v425_v55 = vadd.f32 %v421_v54, %v399_v53 }
 0x21c   : > { %v433_v57 = vld [vmem:[#allocation4] sm:$0xff] }
 0x21d   : > { %427 = vst.msk [vmem:[#allocation4 + $0x8] sm:$0xff] %vm299_vm0, %v425_v55 }
 0x224   : > { %v434_v59 = vld [vmem:[#allocation4 + $0x8] sm:$0xff] }
 0x26b   : > { %v442_v56 = vpop.permute.xlu2 %441 }
 0x26c   : > { %v449_v58 = vmul.f32 %v442_v56, %v433_v57 }
 0x26e   : > { %451 = vst.msk [vmem:[%s287_s29] sm:$0xff] %vm299_vm0, %v449_v58 }
 0x28b   : > { %v447_v60 = vpop.permute.xlu1 %446 }
 0x28c   : > { %v450_v61 = vmul.f32 %v447_v60, %v434_v59 }
 0x28e   : > { %452 = vst.msk [vmem:[%s287_s29 + $0x8] sm:$0xff] %vm299_vm0, %v450_v61 }
 0x28f PF: > { %s13_s14 = sadd.s32 1, %s679_s14   ;;  %s777_s12 = smov %s675_s13 }
 0x290   : > { %p10_p5 = scmp.ge.s32.totalorder %s13_s14, 10   ;;  %s778_s13 = smov %s780_s15 }
 0x292   :  { %12 = sbr.rel (!%p10_p5) target bundleno = 2 (0x2), region = 76 }

// kernel: rotary_attention.5
= control target key start
LH: loop header
LB: loop body
LE: loop exit
PB: predicated region body
PF: predicated region fallthrough
CT: control target
= control target key end

     0   :  { %vm20_vm0 = vcmask 523264   ;;  %v167_v6 = vmov 0.0   ;;  %s251_s0 = inlined_call_operand.vmem [shape: f32[32,64], index: 0, kind: input, shape index: {}]   ;;  %s252_s1 = inlined_call_operand.vmem [shape: f32[64,64], index: 1, kind: input, shape index: {}]   ;;  %s253_s2 = inlined_call_operand.vmem [shape: f32[1,64], index: 2, kind: input, shape index: {}]   ;;  %s254_s3 = inlined_call_operand.hbm [shape: f32[32,64], index: 3, kind: output, shape index: {}]  }
   0x1   :  { %v37_v0 = vld [vmem:[%s252_s1 + $0x30] sm:$0xff]  ;;  %v38_v1 = vld [vmem:[%s252_s1 + $0x38] sm:$0xff]  ;;  %v35_v3 = vld [vmem:[%s252_s1 + $0x20] sm:$0xff]  ;;  %21 = vst.msk [vmem:[#allocation2] sm:$0xff] %vm20_vm0, %v167_v6 }
   0x2   :  { %v42_v2 = vpack.c.bf16 %v38_v1, %v37_v0  ;;  %v36_v4 = vld [vmem:[%s252_s1 + $0x28] sm:$0xff] }
   0x4   :  { %v64_v5 = vsel %vm20_vm0, %v42_v2, 0 }
   0x5   :  { %70 = vmatpush.bf16.xpose.msra.mxu0 %v64_v5  ;;  %132 = vmatpush.bf16.xpose.msra.mxu1 %v64_v5 }
   0x6   :  { %8 = vsyncpa [#allocation4], 0  ;;  %v41_v7 = vpack.c.bf16 %v36_v4, %v35_v3  ;;  %22 = vst.msk [vmem:[#allocation2 + $0x8] sm:$0xff] %vm20_vm0, %v167_v6  ;;  %v33_v9 = vld [vmem:[%s252_s1 + $0x10] sm:$0xff]  ;;  %v34_v10 = vld [vmem:[%s252_s1 + $0x18] sm:$0xff]  ;;  %s168_s9 = smov [#allocation3]  }
   0x7   :  { %23 = vst.msk [vmem:[#allocation2 + $0x10] sm:$0xff] %vm20_vm0, %v167_v6  ;;  %v40_v11 = vpack.c.bf16 %v34_v10, %v33_v9  ;;  %v31_v13 = vld [vmem:[%s252_s1] sm:$0xff]  ;;  %v32_v14 = vld [vmem:[%s252_s1 + $0x8] sm:$0xff]  ;;  %v27_v19 = vld [vmem:[%s251_s0 + $0x10] sm:$0xff]  ;;  %s116_s10 = sshll.u32 %s168_s9, 4  ;;  %s118_s12 = sshll.u32 %s254_s3, 4  ;;  %s117_s10 = int_to_ptr.vmem [resolvable:$true] %s116_s10  ;;  %s119_s12 = int_to_ptr.hbm [resolvable:$true] %s118_s12 }
   0x8   :  { %24 = vst.msk [vmem:[#allocation2 + $0x18] sm:$0xff] %vm20_vm0, %v167_v6  ;;  %v61_v8 = vsel %vm20_vm0, %v41_v7, 0  ;;  %v39_v15 = vpack.c.bf16 %v32_v14, %v31_v13  ;;  %v25_v17 = vld [vmem:[%s251_s0] sm:$0xff]  ;;  %v26_v18 = vld [vmem:[%s251_s0 + $0x8] sm:$0xff]  ;;  %v28_v20 = vld [vmem:[%s251_s0 + $0x18] sm:$0xff]  ;;  %s169_s13 = smov 128  }
   0x9   :  { %v58_v12 = vsel %vm20_vm0, %v40_v11, 0  ;;  %v29_v21 = vpack.c.bf16 %v26_v18, %v25_v17  ;;  %v30_v22 = vpack.c.bf16 %v28_v20, %v27_v19  ;;  %v43_v23 = vld [vmem:[#allocation2] sm:$0xff]  ;;  %s170_s14 = smov 8  }
   0xa   :  { %v55_v16 = vsel %vm20_vm0, %v39_v15, 0  ;;  %v140_v31 = vld [vmem:[%s253_s2] ss:$0 sm:$0xff] }
   0xd   :  { %71 = vmatpush.bf16.xpose.msra.mxu0 %v61_v8  ;;  %133 = vmatpush.bf16.xpose.msra.mxu1 %v61_v8  ;;  %v44_v29 = vld [vmem:[#allocation2 + $0x8] sm:$0xff] }
   0xe   :  { %v45_v24 = vld [vmem:[#allocation2 + $0x10] sm:$0xff] }
   0xf   :  { %v46_v30 = vld [vmem:[#allocation2 + $0x18] sm:$0xff] }
  0x15   :  { %72 = vmatpush.bf16.xpose.msra.mxu0 %v58_v12  ;;  %134 = vmatpush.bf16.xpose.msra.mxu1 %v58_v12 }
  0x1d   :  { %73 = vmatpush.bf16.xpose.msra.mxu0 %v55_v16  ;;  %135 = vmatpush.bf16.xpose.msra.mxu1 %v55_v16 }
  0x24   :  { %130 = vmatmul.msk.bf16.vlgmr.msra.gmra.mxu0 %vm20_vm0, %v29_v21  ;;  %131 = vmatmul.msk.bf16.vlgmr.msra.gmra.mxu1 %vm20_vm0, %v30_v22 }
  0xa1   :  { %v75_v25 = vpop.f32.mrf.mxu0  ;;  %v80_v26 = vpop.f32.mrf.mxu1 }
  0xa2   :  { %v85_v27 = vadd.f32 %v75_v25, %v43_v23  ;;  %v87_v28 = vadd.f32 %v80_v26, %v45_v24 }
  0xa4   :  { %89 = vst.msk [vmem:[#allocation2] sm:$0xff] %vm20_vm0, %v85_v27 }
  0xa5   :  { %91 = vst.msk [vmem:[#allocation2 + $0x10] sm:$0xff] %vm20_vm0, %v87_v28 }
  0xa9   :  { %v77_v32 = vpop.f32.mrf.mxu0  ;;  %v82_v33 = vpop.f32.mrf.mxu1 }
  0xaa   :  { %v86_v34 = vadd.f32 %v77_v32, %v44_v29  ;;  %v88_v35 = vadd.f32 %v82_v33, %v46_v30 }
  0xab   :  { %v96_v36 = vld [vmem:[#allocation2] sm:$0xff] }
  0xac   :  { %90 = vst.msk [vmem:[#allocation2 + $0x8] sm:$0xff] %vm20_vm0, %v86_v34  ;;  %v98_v37 = vld [vmem:[#allocation2 + $0x10] sm:$0xff]  ;;  %v104_v38 = vadd.f32 %v140_v31, %v96_v36 }
  0xad   :  { %92 = vst.msk [vmem:[#allocation2 + $0x18] sm:$0xff] %vm20_vm0, %v88_v35  ;;  %v106_v39 = vadd.f32 %v140_v31, %v98_v37 }
  0xae   :  { %108 = vst.msk [vmem:[#allocation3] sm:$0xff] %vm20_vm0, %v104_v38 }
  0xaf   :  { %110 = vst.msk [vmem:[#allocation3 + $0x10] sm:$0xff] %vm20_vm0, %v106_v39 }
  0xb3   :  { %v97_v40 = vld [vmem:[#allocation2 + $0x8] sm:$0xff] }
  0xb4   :  { %v99_v41 = vld [vmem:[#allocation2 + $0x18] sm:$0xff]  ;;  %v105_v42 = vadd.f32 %v140_v31, %v97_v40 }
  0xb5   :  { %v107_v43 = vadd.f32 %v140_v31, %v99_v41 }
  0xb6   :  { %109 = vst.msk [vmem:[#allocation3 + $0x8] sm:$0xff] %vm20_vm0, %v105_v42 }
  0xb7   :  { %111 = vst.msk [vmem:[#allocation3 + $0x18] sm:$0xff] %vm20_vm0, %v107_v43 }
  0xb8   :  { %124 = dma.vmem_to_hbm [thread:$0]  %s117_s10, 512, %s119_s12, [#allocation4], %s169_s13, %s169_s13, %s170_s14  }
  0xb9   :  { %165 = dma.done.wait [#allocation4], 512  }
  0xba   :  { %166 = vsyncadd [#allocation4], 4294966784 }
  0xbb   :  { %129 = vsyncpa [#allocation4], 1 }

</bundles_post_ra>
